<compile_context>
chip_gen: v6e
topology: v6e:2x2x1
jax: 0.10.0
libtpu: 0.0.40
codegen_flags: <defaults>
</compile_context>

<pallas_src>
import functools
import math

import jax
import jax.numpy as jnp
from jax.experimental import pallas as pl
from jax.experimental.pallas import tpu as pltpu


_VMEM_LIMIT_BYTES = 32 * 1024 * 1024  # fits default scoped VMEM on v5e/v6e/v7x


# ----------------------------- tiling helpers ------------------------------ #

def _pick_tile_m(M, max_tm=128):
    """Largest sublane-aligned (multiple-of-8) tile dividing M, capped at max_tm.

    Prefers a tiling with >= 2 blocks so the 'parallel' grid axis has work to
    shard across TensorCores (v7x has 2 TC/chip)."""
    cap = min(M, max_tm)
    cap -= cap % 8
    best_any = None
    for t in range(cap, 0, -8):
        if M % t == 0:
            if best_any is None:
                best_any = t
            if M // t >= 2:
                return t
    return best_any if best_any is not None else M


def _pick_tile_k(K, max_tk=512):
    """K tile: full K when small, else a 128-multiple divisor (MXU-aligned)."""
    if K <= max_tk:
        return K
    cap = max_tk - (max_tk % 128)
    for t in range(cap, 0, -128):
        if K % t == 0:
            return t
    return K


def _gelu(x):
    # BERT gelu (tanh approximation, as in the original TF BERT code).
    return 0.5 * x * (1.0 + jnp.tanh(0.7978845608028654 *
                                     (x + 0.044715 * x * x * x)))


# ----------------------------- Pallas kernels ------------------------------ #

def _embed_ln_kernel(we_ref, pe_ref, te_ref, g_ref, b_ref, o_ref, *, eps):
    h = (we_ref[...] + pe_ref[...] + te_ref[...]).astype(jnp.float32)
    mu = jnp.mean(h, axis=-1, keepdims=True)
    var = jnp.mean(jnp.square(h - mu), axis=-1, keepdims=True)
    o_ref[...] = ((h - mu) * jax.lax.rsqrt(var + eps) * g_ref[...]
                  + b_ref[...]).astype(o_ref.dtype)


def pallas_embed_layernorm(we, pe, te, gamma, beta, eps=1e-12):
    """LayerNorm(word + pos + type) over last axis. Inputs: (M, H)."""
    M, H = we.shape
    tm = _pick_tile_m(M)
    kern = functools.partial(_embed_ln_kernel, eps=eps)
    return pl.pallas_call(
        kern,
        out_shape=jax.ShapeDtypeStruct((M, H), we.dtype),
        grid=(M // tm,),
        in_specs=[pl.BlockSpec((tm, H), lambda i: (i, 0)),
                  pl.BlockSpec((tm, H), lambda i: (i, 0)),
                  pl.BlockSpec((tm, H), lambda i: (i, 0)),
                  pl.BlockSpec((1, H), lambda i: (0, 0)),
                  pl.BlockSpec((1, H), lambda i: (0, 0))],
        out_specs=pl.BlockSpec((tm, H), lambda i: (i, 0)),
        compiler_params=pltpu.CompilerParams(
            dimension_semantics=("parallel",),
            vmem_limit_bytes=_VMEM_LIMIT_BYTES),
        cost_estimate=pl.CostEstimate(
            flops=int(10 * M * H), transcendentals=int(M),
            bytes_accessed=int(4 * (4 * M * H + 2 * H))),
    )(we, pe, te, gamma.reshape(1, H), beta.reshape(1, H))


def _mhsa_block_kernel(x_ref, wqkv_ref, bqkv_ref, wo_ref, bo_ref, g_ref, b_ref,
                       mask_ref, o_ref, *, num_heads, head_dim, scale, eps):
    x = x_ref[0].astype(jnp.float32)                 # (S, H)
    seq, hidden = x.shape

    # Fused QKV projection: one (S,H) @ (H,3H) matmul.
    qkv = jnp.dot(x, wqkv_ref[...], preferred_element_type=jnp.float32)
    qkv = qkv + bqkv_ref[...]                        # (S, 3H)

    bias = mask_ref[0]                               # (1, S) additive mask
    wo = wo_ref[...]                                 # (H, H)

    # Per-head attention; output projection is accumulated per head so the
    # (S, H) context never needs a concat/transpose or an HBM round trip.
    attn_out = bo_ref[...].astype(jnp.float32)       # (1, H) -> broadcast
    for h in range(num_heads):
        lo = h * head_dim
        hi = lo + head_dim
        q_h = qkv[:, lo:hi]                          # (S, dh)
        k_h = qkv[:, hidden + lo:hidden + hi]        # (S, dh)
        v_h = qkv[:, 2 * hidden + lo:2 * hidden + hi]

        # scores = q @ k^T * scale + mask
        s = jax.lax.dot_general(q_h, k_h, (((1,), (1,)), ((), ())),
                                preferred_element_type=jnp.float32) * scale
        s = s + bias                                 # (S, S)
        m = jnp.max(s, axis=-1, keepdims=True)
        p = jnp.exp(s - m)
        denom = jnp.sum(p, axis=-1, keepdims=True)
        p = p * pl.reciprocal(denom, approx=True)    # EUP, keeps VALU free
        ctx_h = jnp.dot(p, v_h, preferred_element_type=jnp.float32)  # (S, dh)
        attn_out = attn_out + jnp.dot(
            ctx_h, wo[lo:hi, :], preferred_element_type=jnp.float32)

    # Residual add + LayerNorm epilogue (f32 stats).
    hres = attn_out + x
    mu = jnp.mean(hres, axis=-1, keepdims=True)
    var = jnp.mean(jnp.square(hres - mu), axis=-1, keepdims=True)
    o_ref[0] = ((hres - mu) * jax.lax.rsqrt(var + eps) * g_ref[...]
                + b_ref[...]).astype(o_ref.dtype)


def pallas_mhsa_block(x_bsh, wqkv, bqkv, wo, bo, ln_g, ln_b, mask_bias,
                      *, num_heads, head_dim, scale, eps=1e-12):
    """Fused multi-head self-attention block: LN(x + Wo·Attn(QKV(x)))."""
    B, S, H = x_bsh.shape
    kern = functools.partial(_mhsa_block_kernel, num_heads=num_heads,
                             head_dim=head_dim, scale=scale, eps=eps)
    flops = (2 * B * S * H * 3 * H          # QKV projection
             + 4 * B * num_heads * S * S * head_dim  # scores + context
             + 2 * B * S * H * H)           # output projection
    return pl.pallas_call(
        kern,
        out_shape=jax.ShapeDtypeStruct((B, S, H), x_bsh.dtype),
        grid=(B,),
        in_specs=[
            pl.BlockSpec((1, S, H), lambda b: (b, 0, 0)),
            pl.BlockSpec((H, 3 * H), lambda b: (0, 0)),
            pl.BlockSpec((1, 3 * H), lambda b: (0, 0)),
            pl.BlockSpec((H, H), lambda b: (0, 0)),
            pl.BlockSpec((1, H), lambda b: (0, 0)),
            pl.BlockSpec((1, H), lambda b: (0, 0)),
            pl.BlockSpec((1, H), lambda b: (0, 0)),
            pl.BlockSpec((1, 1, S), lambda b: (b, 0, 0)),
        ],
        out_specs=pl.BlockSpec((1, S, H), lambda b: (b, 0, 0)),
        compiler_params=pltpu.CompilerParams(
            dimension_semantics=("parallel",),
            vmem_limit_bytes=_VMEM_LIMIT_BYTES),
        cost_estimate=pl.CostEstimate(
            flops=int(flops),
            transcendentals=int(B * num_heads * S * S + B * S),
            bytes_accessed=int(4 * (2 * B * S * H + 4 * H * H + 4 * H + B * S))),
    )(x_bsh, wqkv, bqkv.reshape(1, 3 * H), wo, bo.reshape(1, H),
      ln_g.reshape(1, H), ln_b.reshape(1, H), mask_bias)


def _ffn_block_kernel(x_ref, wi_ref, bi_ref, wo2_ref, bo2_ref, g_ref, b_ref,
                      o_ref, inter_ref, *, eps):
    x = x_ref[...].astype(jnp.float32)
    inter = jnp.dot(x, wi_ref[...], preferred_element_type=jnp.float32)
    inter = _gelu(inter + bi_ref[...])
    inter_ref[...] = inter          # FFN intermediate stays VMEM-resident
    y = jnp.dot(inter_ref[...], wo2_ref[...],
                preferred_element_type=jnp.float32) + bo2_ref[...]
    hres = y + x                    # residual
    mu = jnp.mean(hres, axis=-1, keepdims=True)
    var = jnp.mean(jnp.square(hres - mu), axis=-1, keepdims=True)
    o_ref[...] = ((hres - mu) * jax.lax.rsqrt(var + eps) * g_ref[...]
                  + b_ref[...]).astype(o_ref.dtype)


def pallas_ffn_block(x, wi, bi, wo2, bo2, ln_g, ln_b, eps=1e-12):
    """Fused FFN block: LN(x + Wo2·GELU(Wi·x + bi) + bo2).  x: (M, H)."""
    M, H = x.shape
    I = wi.shape[1]
    tm = _pick_tile_m(M)
    kern = functools.partial(_ffn_block_kernel, eps=eps)
    return pl.pallas_call(
        kern,
        out_shape=jax.ShapeDtypeStruct((M, H), x.dtype),
        grid=(M // tm,),
        in_specs=[
            pl.BlockSpec((tm, H), lambda i: (i, 0)),
            pl.BlockSpec((H, I), lambda i: (0, 0)),
            pl.BlockSpec((1, I), lambda i: (0, 0)),
            pl.BlockSpec((I, H), lambda i: (0, 0)),
            pl.BlockSpec((1, H), lambda i: (0, 0)),
            pl.BlockSpec((1, H), lambda i: (0, 0)),
            pl.BlockSpec((1, H), lambda i: (0, 0)),
        ],
        out_specs=pl.BlockSpec((tm, H), lambda i: (i, 0)),
        scratch_shapes=[pltpu.VMEM((tm, I), jnp.float32)],
        compiler_params=pltpu.CompilerParams(
            dimension_semantics=("parallel",),
            vmem_limit_bytes=_VMEM_LIMIT_BYTES),
        cost_estimate=pl.CostEstimate(
            flops=int(4 * M * H * I + 10 * M * H),
            transcendentals=int(M * I + M),
            bytes_accessed=int(4 * (2 * M * H + 2 * H * I + I + 3 * H))),
    )(x, wi, bi.reshape(1, I), wo2, bo2.reshape(1, H),
      ln_g.reshape(1, H), ln_b.reshape(1, H))


def _head_kernel(x_ref, w_ref, b_ref, o_ref, acc_ref):
    @pl.when(pl.program_id(1) == 0)
    def _():
        acc_ref[...] = jnp.zeros_like(acc_ref)

    acc_ref[...] += jnp.dot(x_ref[...], w_ref[...],
                            preferred_element_type=jnp.float32)

    @pl.when(pl.program_id(1) == pl.num_programs(1) - 1)
    def _():
        o_ref[...] = (acc_ref[...] + b_ref[...]).astype(o_ref.dtype)


def pallas_classifier(x, w, b):
    """Tiled y = x @ w + b with a lane-dense (128-padded) output."""
    M, K = x.shape
    C = w.shape[1]
    Np = ((C + 127) // 128) * 128            # lane-dense output width
    w_p = jnp.pad(w, ((0, 0), (0, Np - C)))
    b_p = jnp.pad(b, (0, Np - C)).reshape(1, Np)
    tm = _pick_tile_m(M)
    tk = _pick_tile_k(K)
    out = pl.pallas_call(
        _head_kernel,
        out_shape=jax.ShapeDtypeStruct((M, Np), x.dtype),
        grid=(M // tm, K // tk),
        in_specs=[pl.BlockSpec((tm, tk), lambda i, k: (i, k)),
                  pl.BlockSpec((tk, Np), lambda i, k: (k, 0)),
                  pl.BlockSpec((1, Np), lambda i, k: (0, 0))],
        out_specs=pl.BlockSpec((tm, Np), lambda i, k: (i, 0)),
        scratch_shapes=[pltpu.VMEM((tm, Np), jnp.float32)],
        compiler_params=pltpu.CompilerParams(
            dimension_semantics=("parallel", "arbitrary"),
            vmem_limit_bytes=_VMEM_LIMIT_BYTES),
        cost_estimate=pl.CostEstimate(
            flops=int(2 * M * K * Np), transcendentals=0,
            bytes_accessed=int(4 * (M * K + K * Np + M * Np))),
    )(x, w_p, b_p)
    return out[:, :C]


# ----------------------------- model (glue) -------------------------------- #

CONFIG = dict(
    vocab_size=100,
    hidden_size=32,
    num_layers=2,
    num_heads=2,
    intermediate_size=64,
    max_position=32,
    type_vocab_size=2,
    num_classes=5,
)


def init_params(key, cfg):
    H = cfg["hidden_size"]
    I = cfg["intermediate_size"]
    std = 0.02

    def dense(k, shape):
        return jax.random.normal(k, shape, jnp.float32) * std

    keys = jax.random.split(key, 8 + cfg["num_layers"] * 8)
    p = {
        "word_emb": dense(keys[0], (cfg["vocab_size"], H)),
        "pos_emb": dense(keys[1], (cfg["max_position"], H)),
        "type_emb": dense(keys[2], (cfg["type_vocab_size"], H)),
        "emb_ln_g": jnp.ones((H,), jnp.float32),
        "emb_ln_b": jnp.zeros((H,), jnp.float32),
        "cls_w": dense(keys[3], (H, cfg["num_classes"])),
        "cls_b": jnp.zeros((cfg["num_classes"],), jnp.float32),
        "layers": [],
    }
    for l in range(cfg["num_layers"]):
        kk = keys[8 + l * 8: 8 + (l + 1) * 8]
        p["layers"].append({
            "wq": dense(kk[0], (H, H)), "bq": jnp.zeros((H,), jnp.float32),
            "wk": dense(kk[1], (H, H)), "bk": jnp.zeros((H,), jnp.float32),
            "wv": dense(kk[2], (H, H)), "bv": jnp.zeros((H,), jnp.float32),
            "wo": dense(kk[3], (H, H)), "bo": jnp.zeros((H,), jnp.float32),
            "ln1_g": jnp.ones((H,), jnp.float32), "ln1_b": jnp.zeros((H,), jnp.float32),
            "wi": dense(kk[4], (H, I)), "bi": jnp.zeros((I,), jnp.float32),
            "wo2": dense(kk[5], (I, H)), "bo2": jnp.zeros((H,), jnp.float32),
            "ln2_g": jnp.ones((H,), jnp.float32), "ln2_b": jnp.zeros((H,), jnp.float32),
        })
    return p


def bert_for_sequence_labeling(params, token_idxs, token_type_idxs, masks, cfg):
    B, S = token_idxs.shape
    H = cfg["hidden_size"]
    nh = cfg["num_heads"]
    dh = H // nh
    M = B * S

    # --- embeddings (table gathers stay in XLA; add + LN fused in Pallas) ---
    word_e = params["word_emb"][token_idxs]                       # (B,S,H)
    pos_e = jnp.broadcast_to(params["pos_emb"][:S][None, :, :], (B, S, H))
    type_e = params["type_emb"][token_type_idxs]                  # (B,S,H)
    x = pallas_embed_layernorm(
        word_e.reshape(M, H), pos_e.reshape(M, H), type_e.reshape(M, H),
        params["emb_ln_g"], params["emb_ln_b"])                   # (M,H)

    # additive attention-mask bias: 0 where attended, -1e9 where masked out
    if masks is None:
        mask_bias = jnp.zeros((B, 1, S), jnp.float32)
    else:
        mask_bias = (1.0 - masks.astype(jnp.float32))[:, None, :] * -1e9

    scale = 1.0 / math.sqrt(dh)

    for lp in params["layers"]:
        # fuse Q/K/V weights into one (H, 3H) projection
        wqkv = jnp.concatenate([lp["wq"], lp["wk"], lp["wv"]], axis=1)
        bqkv = jnp.concatenate([lp["bq"], lp["bk"], lp["bv"]])

        x = pallas_mhsa_block(
            x.reshape(B, S, H), wqkv, bqkv, lp["wo"], lp["bo"],
            lp["ln1_g"], lp["ln1_b"], mask_bias,
            num_heads=nh, head_dim=dh, scale=scale).reshape(M, H)

        x = pallas_ffn_block(x, lp["wi"], lp["bi"], lp["wo2"], lp["bo2"],
                             lp["ln2_g"], lp["ln2_b"])

    # --- classification head (dropout = identity at eval) ---
    logits = pallas_classifier(x, params["cls_w"], params["cls_b"])  # (M, C)
    return logits.reshape(B, S, cfg["num_classes"])


# --------------------------------- main ------------------------------------ #

if __name__ == "__main__":
    cfg = CONFIG
    B, S = 2, 8

    key = jax.random.PRNGKey(0)
    k_par, k_tok = jax.random.split(key)
    params = init_params(k_par, cfg)

    token_idxs = jax.random.randint(k_tok, (B, S), 0, cfg["vocab_size"],
                                    dtype=jnp.int32)
    token_type_idxs = jnp.zeros((B, S), jnp.int32)
    masks = jnp.ones((B, S), jnp.int32)

    fwd = jax.jit(functools.partial(bert_for_sequence_labeling, cfg=cfg))
    out = fwd(params, token_idxs, token_type_idxs, masks)
    out = jax.block_until_ready(out)

    assert out.shape == (B, S, cfg["num_classes"])
    assert bool(jnp.all(jnp.isfinite(out)))
    print("KERNEL_OK")
</pallas_src>

<mosaic_0001>
module attributes {stable_mosaic.version = 11 : i64} {
  func.func @_embed_ln_kernel(%arg0: i32, %arg1: memref<8x32xf32, #tpu.memory_space<vmem>>, %arg2: memref<8x32xf32, #tpu.memory_space<vmem>>, %arg3: memref<8x32xf32, #tpu.memory_space<vmem>>, %arg4: memref<1x32xf32, #tpu.memory_space<vmem>>, %arg5: memref<1x32xf32, #tpu.memory_space<vmem>>, %arg6: memref<8x32xf32, #tpu.memory_space<vmem>>) attributes {dimension_semantics = [#tpu.dimension_semantics<parallel>], iteration_bounds = array<i64: 2>, scalar_prefetch = 0 : i64, scratch_operands = 0 : i64, tpu.core_type = #tpu.core_type<tc>, window_params = [{transform_indices = @transform_0, window_bounds = array<i64: 8, 32>}, {transform_indices = @transform_1, window_bounds = array<i64: 8, 32>}, {transform_indices = @transform_2, window_bounds = array<i64: 8, 32>}, {pipeline_mode = #tpu.pipeline_mode<synchronous>, transform_indices = @transform_3, window_bounds = array<i64: 1, 32>}, {pipeline_mode = #tpu.pipeline_mode<synchronous>, transform_indices = @transform_4, window_bounds = array<i64: 1, 32>}, {transform_indices = @transform_5, window_bounds = array<i64: 8, 32>}]} {
    %c0 = arith.constant 0 : index
    %c0_0 = arith.constant 0 : index
    %0 = vector.load %arg1[%c0, %c0_0] : memref<8x32xf32, #tpu.memory_space<vmem>>, vector<8x32xf32>
    %c0_1 = arith.constant 0 : index
    %c0_2 = arith.constant 0 : index
    %1 = vector.load %arg2[%c0_1, %c0_2] : memref<8x32xf32, #tpu.memory_space<vmem>>, vector<8x32xf32>
    %2 = arith.addf %0, %1 : vector<8x32xf32>
    %c0_3 = arith.constant 0 : index
    %c0_4 = arith.constant 0 : index
    %3 = vector.load %arg3[%c0_3, %c0_4] : memref<8x32xf32, #tpu.memory_space<vmem>>, vector<8x32xf32>
    %4 = arith.addf %2, %3 : vector<8x32xf32>
    %cst = arith.constant dense<0.000000e+00> : vector<8xf32>
    %5 = vector.multi_reduction <add>, %4, %cst [1] : vector<8x32xf32> to vector<8xf32>
    %6 = vector.shape_cast %5 : vector<8xf32> to vector<8x1xf32>
    %cst_5 = arith.constant 3.200000e+01 : f32
    %7 = vector.broadcast %cst_5 : f32 to vector<8x1xf32>
    %8 = arith.divf %6, %7 : vector<8x1xf32>
    %9 = vector.broadcast %8 : vector<8x1xf32> to vector<8x32xf32>
    %10 = arith.subf %4, %9 : vector<8x32xf32>
    %11 = arith.mulf %10, %10 : vector<8x32xf32>
    %cst_6 = arith.constant dense<0.000000e+00> : vector<8xf32>
    %12 = vector.multi_reduction <add>, %11, %cst_6 [1] : vector<8x32xf32> to vector<8xf32>
    %13 = vector.shape_cast %12 : vector<8xf32> to vector<8x1xf32>
    %cst_7 = arith.constant 3.200000e+01 : f32
    %14 = vector.broadcast %cst_7 : f32 to vector<8x1xf32>
    %15 = arith.divf %13, %14 : vector<8x1xf32>
    %16 = vector.broadcast %8 : vector<8x1xf32> to vector<8x32xf32>
    %17 = arith.subf %4, %16 : vector<8x32xf32>
    %cst_8 = arith.constant 9.99999996E-13 : f32
    %18 = vector.broadcast %cst_8 : f32 to vector<8x1xf32>
    %19 = arith.addf %15, %18 : vector<8x1xf32>
    %20 = math.rsqrt %19 : vector<8x1xf32>
    %21 = vector.broadcast %20 : vector<8x1xf32> to vector<8x32xf32>
    %22 = arith.mulf %17, %21 : vector<8x32xf32>
    %c0_9 = arith.constant 0 : index
    %c0_10 = arith.constant 0 : index
    %23 = vector.load %arg4[%c0_9, %c0_10] : memref<1x32xf32, #tpu.memory_space<vmem>>, vector<1x32xf32>
    %24 = vector.broadcast %23 : vector<1x32xf32> to vector<8x32xf32>
    %25 = arith.mulf %22, %24 : vector<8x32xf32>
    %c0_11 = arith.constant 0 : index
    %c0_12 = arith.constant 0 : index
    %26 = vector.load %arg5[%c0_11, %c0_12] : memref<1x32xf32, #tpu.memory_space<vmem>>, vector<1x32xf32>
    %27 = vector.broadcast %26 : vector<1x32xf32> to vector<8x32xf32>
    %28 = arith.addf %25, %27 : vector<8x32xf32>
    %c0_13 = arith.constant 0 : index
    %c0_14 = arith.constant 0 : index
    %29 = vector.load %arg6[%c0_13, %c0_14] : memref<8x32xf32, #tpu.memory_space<vmem>>, vector<8x32xf32>
    tpu.vector_store %arg6[%c0_13, %c0_14], %28 {strides = array<i32>} : memref<8x32xf32, #tpu.memory_space<vmem>>, vector<8x32xf32>,
    return
  }
  func.func @transform_0(%arg0: i32) -> (i32, i32) {
    %c0_i32 = arith.constant 0 : i32
    %c0_i32_0 = arith.constant 0 : i32
    return %arg0, %c0_i32 : i32, i32
  }
  func.func @transform_1(%arg0: i32) -> (i32, i32) {
    %c0_i32 = arith.constant 0 : i32
    %c0_i32_0 = arith.constant 0 : i32
    return %arg0, %c0_i32 : i32, i32
  }
  func.func @transform_2(%arg0: i32) -> (i32, i32) {
    %c0_i32 = arith.constant 0 : i32
    %c0_i32_0 = arith.constant 0 : i32
    return %arg0, %c0_i32 : i32, i32
  }
  func.func @transform_3(%arg0: i32) -> (i32, i32) {
    %c0_i32 = arith.constant 0 : i32
    %c0_i32_0 = arith.constant 0 : i32
    %c0_i32_1 = arith.constant 0 : i32
    return %c0_i32, %c0_i32_0 : i32, i32
  }
  func.func @transform_4(%arg0: i32) -> (i32, i32) {
    %c0_i32 = arith.constant 0 : i32
    %c0_i32_0 = arith.constant 0 : i32
    %c0_i32_1 = arith.constant 0 : i32
    return %c0_i32, %c0_i32_0 : i32, i32
  }
  func.func @transform_5(%arg0: i32) -> (i32, i32) {
    %c0_i32 = arith.constant 0 : i32
    %c0_i32_0 = arith.constant 0 : i32
    return %arg0, %c0_i32 : i32, i32
  }
}

module attributes {stable_mosaic.version = 11 : i64} {
  func.func @_mhsa_block_kernel(%arg0: i32, %arg1: memref<1x8x32xf32, #tpu.memory_space<vmem>>, %arg2: memref<32x96xf32, #tpu.memory_space<vmem>>, %arg3: memref<1x96xf32, #tpu.memory_space<vmem>>, %arg4: memref<32x32xf32, #tpu.memory_space<vmem>>, %arg5: memref<1x32xf32, #tpu.memory_space<vmem>>, %arg6: memref<1x32xf32, #tpu.memory_space<vmem>>, %arg7: memref<1x32xf32, #tpu.memory_space<vmem>>, %arg8: memref<1x1x8xf32, #tpu.memory_space<vmem>>, %arg9: memref<1x8x32xf32, #tpu.memory_space<vmem>>) attributes {dimension_semantics = [#tpu.dimension_semantics<parallel>], iteration_bounds = array<i64: 2>, scalar_prefetch = 0 : i64, scratch_operands = 0 : i64, tpu.core_type = #tpu.core_type<tc>, window_params = [{transform_indices = @transform_0, window_bounds = array<i64: 1, 8, 32>}, {pipeline_mode = #tpu.pipeline_mode<synchronous>, transform_indices = @transform_1, window_bounds = array<i64: 32, 96>}, {pipeline_mode = #tpu.pipeline_mode<synchronous>, transform_indices = @transform_2, window_bounds = array<i64: 1, 96>}, {pipeline_mode = #tpu.pipeline_mode<synchronous>, transform_indices = @transform_3, window_bounds = array<i64: 32, 32>}, {pipeline_mode = #tpu.pipeline_mode<synchronous>, transform_indices = @transform_4, window_bounds = array<i64: 1, 32>}, {pipeline_mode = #tpu.pipeline_mode<synchronous>, transform_indices = @transform_5, window_bounds = array<i64: 1, 32>}, {pipeline_mode = #tpu.pipeline_mode<synchronous>, transform_indices = @transform_6, window_bounds = array<i64: 1, 32>}, {transform_indices = @transform_7, window_bounds = array<i64: 1, 1, 8>}, {transform_indices = @transform_8, window_bounds = array<i64: 1, 8, 32>}]} {
    %c0 = arith.constant 0 : index
    %c0_0 = arith.constant 0 : index
    %c0_1 = arith.constant 0 : index
    %0 = vector.load %arg1[%c0, %c0_0, %c0_1] : memref<1x8x32xf32, #tpu.memory_space<vmem>>, vector<1x8x32xf32>
    %1 = vector.shape_cast %0 : vector<1x8x32xf32> to vector<8x32xf32>
    %c0_2 = arith.constant 0 : index
    %c0_3 = arith.constant 0 : index
    %2 = vector.load %arg2[%c0_2, %c0_3] : memref<32x96xf32, #tpu.memory_space<vmem>>, vector<32x96xf32>
    %cst = arith.constant dense<0.000000e+00> : vector<8x96xf32>
    %3 = tpu.matmul %1, %2, %cst {dimension_numbers = #tpu.dot_dimension_numbers<[1], [0], [0], [1], [0, 0, 1, 1], [], []>} : vector<8x32xf32>, vector<32x96xf32>, vector<8x96xf32> -> vector<8x96xf32>
    %c0_4 = arith.constant 0 : index
    %c0_5 = arith.constant 0 : index
    %4 = vector.load %arg3[%c0_4, %c0_5] : memref<1x96xf32, #tpu.memory_space<vmem>>, vector<1x96xf32>
    %5 = vector.broadcast %4 : vector<1x96xf32> to vector<8x96xf32>
    %6 = arith.addf %3, %5 : vector<8x96xf32>
    %c0_6 = arith.constant 0 : index
    %c0_7 = arith.constant 0 : index
    %c0_8 = arith.constant 0 : index
    %7 = vector.load %arg8[%c0_6, %c0_7, %c0_8] : memref<1x1x8xf32, #tpu.memory_space<vmem>>, vector<1x1x8xf32>
    %8 = vector.shape_cast %7 : vector<1x1x8xf32> to vector<1x8xf32>
    %c0_9 = arith.constant 0 : index
    %c0_10 = arith.constant 0 : index
    %9 = vector.load %arg4[%c0_9, %c0_10] : memref<32x32xf32, #tpu.memory_space<vmem>>, vector<32x32xf32>
    %c0_11 = arith.constant 0 : index
    %c0_12 = arith.constant 0 : index
    %10 = vector.load %arg5[%c0_11, %c0_12] : memref<1x32xf32, #tpu.memory_space<vmem>>, vector<1x32xf32>
    %11 = vector.extract_strided_slice %6 {offsets = [0, 0], sizes = [8, 16], strides = [1, 1]} : vector<8x96xf32> to vector<8x16xf32>
    %12 = vector.extract_strided_slice %6 {offsets = [0, 32], sizes = [8, 16], strides = [1, 1]} : vector<8x96xf32> to vector<8x16xf32>
    %13 = vector.extract_strided_slice %6 {offsets = [0, 64], sizes = [8, 16], strides = [1, 1]} : vector<8x96xf32> to vector<8x16xf32>
    %cst_13 = arith.constant dense<0.000000e+00> : vector<8x8xf32>
    %14 = tpu.matmul %11, %12, %cst_13 {dimension_numbers = #tpu.dot_dimension_numbers<[1], [1], [0], [0], [0, 0, 1, 0], [], []>} : vector<8x16xf32>, vector<8x16xf32>, vector<8x8xf32> -> vector<8x8xf32>
    %cst_14 = arith.constant 2.500000e-01 : f32
    %15 = vector.broadcast %cst_14 : f32 to vector<8x8xf32>
    %16 = arith.mulf %14, %15 : vector<8x8xf32>
    %17 = vector.broadcast %8 : vector<1x8xf32> to vector<8x8xf32>
    %18 = arith.addf %16, %17 : vector<8x8xf32>
    %cst_15 = arith.constant dense<0xFF800000> : vector<8xf32>
    %19 = vector.multi_reduction <maximumf>, %18, %cst_15 [1] : vector<8x8xf32> to vector<8xf32>
    %20 = vector.shape_cast %19 : vector<8xf32> to vector<8x1xf32>
    %21 = vector.broadcast %20 : vector<8x1xf32> to vector<8x8xf32>
    %22 = arith.subf %18, %21 : vector<8x8xf32>
    %23 = math.exp %22 : vector<8x8xf32>
    %cst_16 = arith.constant dense<0.000000e+00> : vector<8xf32>
    %24 = vector.multi_reduction <add>, %23, %cst_16 [1] : vector<8x8xf32> to vector<8xf32>
    %25 = vector.shape_cast %24 : vector<8xf32> to vector<8x1xf32>
    %26 = tpu.reciprocal %25 {approx = true} : vector<8x1xf32> -> vector<8x1xf32>
    %27 = vector.broadcast %26 : vector<8x1xf32> to vector<8x8xf32>
    %28 = arith.mulf %23, %27 : vector<8x8xf32>
    %cst_17 = arith.constant dense<0.000000e+00> : vector<8x16xf32>
    %29 = tpu.matmul %28, %13, %cst_17 {dimension_numbers = #tpu.dot_dimension_numbers<[1], [0], [0], [1], [0, 0, 1, 1], [], []>} : vector<8x8xf32>, vector<8x16xf32>, vector<8x16xf32> -> vector<8x16xf32>
    %30 = vector.extract_strided_slice %9 {offsets = [0, 0], sizes = [16, 32], strides = [1, 1]} : vector<32x32xf32> to vector<16x32xf32>
    %cst_18 = arith.constant dense<0.000000e+00> : vector<8x32xf32>
    %31 = tpu.matmul %29, %30, %cst_18 {dimension_numbers = #tpu.dot_dimension_numbers<[1], [0], [0], [1], [0, 0, 1, 1], [], []>} : vector<8x16xf32>, vector<16x32xf32>, vector<8x32xf32> -> vector<8x32xf32>
    %32 = vector.broadcast %10 : vector<1x32xf32> to vector<8x32xf32>
    %33 = arith.addf %32, %31 : vector<8x32xf32>
    %34 = vector.extract_strided_slice %6 {offsets = [0, 16], sizes = [8, 16], strides = [1, 1]} : vector<8x96xf32> to vector<8x16xf32>
    %35 = vector.extract_strided_slice %6 {offsets = [0, 48], sizes = [8, 16], strides = [1, 1]} : vector<8x96xf32> to vector<8x16xf32>
    %36 = vector.extract_strided_slice %6 {offsets = [0, 80], sizes = [8, 16], strides = [1, 1]} : vector<8x96xf32> to vector<8x16xf32>
    %cst_19 = arith.constant dense<0.000000e+00> : vector<8x8xf32>
    %37 = tpu.matmul %34, %35, %cst_19 {dimension_numbers = #tpu.dot_dimension_numbers<[1], [1], [0], [0], [0, 0, 1, 0], [], []>} : vector<8x16xf32>, vector<8x16xf32>, vector<8x8xf32> -> vector<8x8xf32>
    %cst_20 = arith.constant 2.500000e-01 : f32
    %38 = vector.broadcast %cst_20 : f32 to vector<8x8xf32>
    %39 = arith.mulf %37, %38 : vector<8x8xf32>
    %40 = vector.broadcast %8 : vector<1x8xf32> to vector<8x8xf32>
    %41 = arith.addf %39, %40 : vector<8x8xf32>
    %cst_21 = arith.constant dense<0xFF800000> : vector<8xf32>
    %42 = vector.multi_reduction <maximumf>, %41, %cst_21 [1] : vector<8x8xf32> to vector<8xf32>
    %43 = vector.shape_cast %42 : vector<8xf32> to vector<8x1xf32>
    %44 = vector.broadcast %43 : vector<8x1xf32> to vector<8x8xf32>
    %45 = arith.subf %41, %44 : vector<8x8xf32>
    %46 = math.exp %45 : vector<8x8xf32>
    %cst_22 = arith.constant dense<0.000000e+00> : vector<8xf32>
    %47 = vector.multi_reduction <add>, %46, %cst_22 [1] : vector<8x8xf32> to vector<8xf32>
    %48 = vector.shape_cast %47 : vector<8xf32> to vector<8x1xf32>
    %49 = tpu.reciprocal %48 {approx = true} : vector<8x1xf32> -> vector<8x1xf32>
    %50 = vector.broadcast %49 : vector<8x1xf32> to vector<8x8xf32>
    %51 = arith.mulf %46, %50 : vector<8x8xf32>
    %cst_23 = arith.constant dense<0.000000e+00> : vector<8x16xf32>
    %52 = tpu.matmul %51, %36, %cst_23 {dimension_numbers = #tpu.dot_dimension_numbers<[1], [0], [0], [1], [0, 0, 1, 1], [], []>} : vector<8x8xf32>, vector<8x16xf32>, vector<8x16xf32> -> vector<8x16xf32>
    %53 = vector.extract_strided_slice %9 {offsets = [16, 0], sizes = [16, 32], strides = [1, 1]} : vector<32x32xf32> to vector<16x32xf32>
    %cst_24 = arith.constant dense<0.000000e+00> : vector<8x32xf32>
    %54 = tpu.matmul %52, %53, %cst_24 {dimension_numbers = #tpu.dot_dimension_numbers<[1], [0], [0], [1], [0, 0, 1, 1], [], []>} : vector<8x16xf32>, vector<16x32xf32>, vector<8x32xf32> -> vector<8x32xf32>
    %55 = arith.addf %33, %54 : vector<8x32xf32>
    %56 = arith.addf %55, %1 : vector<8x32xf32>
    %cst_25 = arith.constant dense<0.000000e+00> : vector<8xf32>
    %57 = vector.multi_reduction <add>, %56, %cst_25 [1] : vector<8x32xf32> to vector<8xf32>
    %58 = vector.shape_cast %57 : vector<8xf32> to vector<8x1xf32>
    %cst_26 = arith.constant 3.200000e+01 : f32
    %59 = vector.broadcast %cst_26 : f32 to vector<8x1xf32>
    %60 = arith.divf %58, %59 : vector<8x1xf32>
    %61 = vector.broadcast %60 : vector<8x1xf32> to vector<8x32xf32>
    %62 = arith.subf %56, %61 : vector<8x32xf32>
    %63 = arith.mulf %62, %62 : vector<8x32xf32>
    %cst_27 = arith.constant dense<0.000000e+00> : vector<8xf32>
    %64 = vector.multi_reduction <add>, %63, %cst_27 [1] : vector<8x32xf32> to vector<8xf32>
    %65 = vector.shape_cast %64 : vector<8xf32> to vector<8x1xf32>
    %cst_28 = arith.constant 3.200000e+01 : f32
    %66 = vector.broadcast %cst_28 : f32 to vector<8x1xf32>
    %67 = arith.divf %65, %66 : vector<8x1xf32>
    %68 = vector.broadcast %60 : vector<8x1xf32> to vector<8x32xf32>
    %69 = arith.subf %56, %68 : vector<8x32xf32>
    %cst_29 = arith.constant 9.99999996E-13 : f32
    %70 = vector.broadcast %cst_29 : f32 to vector<8x1xf32>
    %71 = arith.addf %67, %70 : vector<8x1xf32>
    %72 = math.rsqrt %71 : vector<8x1xf32>
    %73 = vector.broadcast %72 : vector<8x1xf32> to vector<8x32xf32>
    %74 = arith.mulf %69, %73 : vector<8x32xf32>
    %c0_30 = arith.constant 0 : index
    %c0_31 = arith.constant 0 : index
    %75 = vector.load %arg6[%c0_30, %c0_31] : memref<1x32xf32, #tpu.memory_space<vmem>>, vector<1x32xf32>
    %76 = vector.broadcast %75 : vector<1x32xf32> to vector<8x32xf32>
    %77 = arith.mulf %74, %76 : vector<8x32xf32>
    %c0_32 = arith.constant 0 : index
    %c0_33 = arith.constant 0 : index
    %78 = vector.load %arg7[%c0_32, %c0_33] : memref<1x32xf32, #tpu.memory_space<vmem>>, vector<1x32xf32>
    %79 = vector.broadcast %78 : vector<1x32xf32> to vector<8x32xf32>
    %80 = arith.addf %77, %79 : vector<8x32xf32>
    %c0_34 = arith.constant 0 : index
    %c0_35 = arith.constant 0 : index
    %c0_36 = arith.constant 0 : index
    %81 = vector.load %arg9[%c0_34, %c0_35, %c0_36] : memref<1x8x32xf32, #tpu.memory_space<vmem>>, vector<1x8x32xf32>
    %82 = vector.shape_cast %81 : vector<1x8x32xf32> to vector<8x32xf32>
    %83 = vector.shape_cast %80 : vector<8x32xf32> to vector<1x8x32xf32>
    tpu.vector_store %arg9[%c0_34, %c0_35, %c0_36], %83 {strides = array<i32>} : memref<1x8x32xf32, #tpu.memory_space<vmem>>, vector<1x8x32xf32>,
    return
  }
  func.func @transform_0(%arg0: i32) -> (i32, i32, i32) {
    %c0_i32 = arith.constant 0 : i32
    %c0_i32_0 = arith.constant 0 : i32
    %c0_i32_1 = arith.constant 0 : i32
    return %arg0, %c0_i32, %c0_i32_0 : i32, i32, i32
  }
  func.func @transform_1(%arg0: i32) -> (i32, i32) {
    %c0_i32 = arith.constant 0 : i32
    %c0_i32_0 = arith.constant 0 : i32
    %c0_i32_1 = arith.constant 0 : i32
    return %c0_i32, %c0_i32_0 : i32, i32
  }
  func.func @transform_2(%arg0: i32) -> (i32, i32) {
    %c0_i32 = arith.constant 0 : i32
    %c0_i32_0 = arith.constant 0 : i32
    %c0_i32_1 = arith.constant 0 : i32
    return %c0_i32, %c0_i32_0 : i32, i32
  }
  func.func @transform_3(%arg0: i32) -> (i32, i32) {
    %c0_i32 = arith.constant 0 : i32
    %c0_i32_0 = arith.constant 0 : i32
    %c0_i32_1 = arith.constant 0 : i32
    return %c0_i32, %c0_i32_0 : i32, i32
  }
  func.func @transform_4(%arg0: i32) -> (i32, i32) {
    %c0_i32 = arith.constant 0 : i32
    %c0_i32_0 = arith.constant 0 : i32
    %c0_i32_1 = arith.constant 0 : i32
    return %c0_i32, %c0_i32_0 : i32, i32
  }
  func.func @transform_5(%arg0: i32) -> (i32, i32) {
    %c0_i32 = arith.constant 0 : i32
    %c0_i32_0 = arith.constant 0 : i32
    %c0_i32_1 = arith.constant 0 : i32
    return %c0_i32, %c0_i32_0 : i32, i32
  }
  func.func @transform_6(%arg0: i32) -> (i32, i32) {
    %c0_i32 = arith.constant 0 : i32
    %c0_i32_0 = arith.constant 0 : i32
    %c0_i32_1 = arith.constant 0 : i32
    return %c0_i32, %c0_i32_0 : i32, i32
  }
  func.func @transform_7(%arg0: i32) -> (i32, i32, i32) {
    %c0_i32 = arith.constant 0 : i32
    %c0_i32_0 = arith.constant 0 : i32
    %c0_i32_1 = arith.constant 0 : i32
    return %arg0, %c0_i32, %c0_i32_0 : i32, i32, i32
  }
  func.func @transform_8(%arg0: i32) -> (i32, i32, i32) {
    %c0_i32 = arith.constant 0 : i32
    %c0_i32_0 = arith.constant 0 : i32
    %c0_i32_1 = arith.constant 0 : i32
    return %arg0, %c0_i32, %c0_i32_0 : i32, i32, i32
  }
}

module attributes {stable_mosaic.version = 11 : i64} {
  func.func @_ffn_block_kernel(%arg0: i32, %arg1: memref<8x32xf32, #tpu.memory_space<vmem>>, %arg2: memref<32x64xf32, #tpu.memory_space<vmem>>, %arg3: memref<1x64xf32, #tpu.memory_space<vmem>>, %arg4: memref<64x32xf32, #tpu.memory_space<vmem>>, %arg5: memref<1x32xf32, #tpu.memory_space<vmem>>, %arg6: memref<1x32xf32, #tpu.memory_space<vmem>>, %arg7: memref<1x32xf32, #tpu.memory_space<vmem>>, %arg8: memref<8x32xf32, #tpu.memory_space<vmem>>, %arg9: memref<8x64xf32, #tpu.memory_space<vmem>>) attributes {dimension_semantics = [#tpu.dimension_semantics<parallel>], iteration_bounds = array<i64: 2>, scalar_prefetch = 0 : i64, scratch_operands = 1 : i64, tpu.core_type = #tpu.core_type<tc>, window_params = [{transform_indices = @transform_0, window_bounds = array<i64: 8, 32>}, {pipeline_mode = #tpu.pipeline_mode<synchronous>, transform_indices = @transform_1, window_bounds = array<i64: 32, 64>}, {pipeline_mode = #tpu.pipeline_mode<synchronous>, transform_indices = @transform_2, window_bounds = array<i64: 1, 64>}, {pipeline_mode = #tpu.pipeline_mode<synchronous>, transform_indices = @transform_3, window_bounds = array<i64: 64, 32>}, {pipeline_mode = #tpu.pipeline_mode<synchronous>, transform_indices = @transform_4, window_bounds = array<i64: 1, 32>}, {pipeline_mode = #tpu.pipeline_mode<synchronous>, transform_indices = @transform_5, window_bounds = array<i64: 1, 32>}, {pipeline_mode = #tpu.pipeline_mode<synchronous>, transform_indices = @transform_6, window_bounds = array<i64: 1, 32>}, {transform_indices = @transform_7, window_bounds = array<i64: 8, 32>}]} {
    %c0 = arith.constant 0 : index
    %c0_0 = arith.constant 0 : index
    %0 = vector.load %arg1[%c0, %c0_0] : memref<8x32xf32, #tpu.memory_space<vmem>>, vector<8x32xf32>
    %c0_1 = arith.constant 0 : index
    %c0_2 = arith.constant 0 : index
    %1 = vector.load %arg2[%c0_1, %c0_2] : memref<32x64xf32, #tpu.memory_space<vmem>>, vector<32x64xf32>
    %cst = arith.constant dense<0.000000e+00> : vector<8x64xf32>
    %2 = tpu.matmul %0, %1, %cst {dimension_numbers = #tpu.dot_dimension_numbers<[1], [0], [0], [1], [0, 0, 1, 1], [], []>} : vector<8x32xf32>, vector<32x64xf32>, vector<8x64xf32> -> vector<8x64xf32>
    %c0_3 = arith.constant 0 : index
    %c0_4 = arith.constant 0 : index
    %3 = vector.load %arg3[%c0_3, %c0_4] : memref<1x64xf32, #tpu.memory_space<vmem>>, vector<1x64xf32>
    %4 = vector.broadcast %3 : vector<1x64xf32> to vector<8x64xf32>
    %5 = arith.addf %2, %4 : vector<8x64xf32>
    %cst_5 = arith.constant 5.000000e-01 : f32
    %6 = vector.broadcast %cst_5 : f32 to vector<8x64xf32>
    %7 = arith.mulf %6, %5 : vector<8x64xf32>
    %cst_6 = arith.constant 4.471500e-02 : f32
    %8 = vector.broadcast %cst_6 : f32 to vector<8x64xf32>
    %9 = arith.mulf %8, %5 : vector<8x64xf32>
    %10 = arith.mulf %9, %5 : vector<8x64xf32>
    %11 = arith.mulf %10, %5 : vector<8x64xf32>
    %12 = arith.addf %5, %11 : vector<8x64xf32>
    %cst_7 = arith.constant 0.797884583 : f32
    %13 = vector.broadcast %cst_7 : f32 to vector<8x64xf32>
    %14 = arith.mulf %13, %12 : vector<8x64xf32>
    %15 = math.tanh %14 : vector<8x64xf32>
    %cst_8 = arith.constant 1.000000e+00 : f32
    %16 = vector.broadcast %cst_8 : f32 to vector<8x64xf32>
    %17 = arith.addf %16, %15 : vector<8x64xf32>
    %18 = arith.mulf %7, %17 : vector<8x64xf32>
    %c0_9 = arith.constant 0 : index
    %c0_10 = arith.constant 0 : index
    %19 = vector.load %arg9[%c0_9, %c0_10] : memref<8x64xf32, #tpu.memory_space<vmem>>, vector<8x64xf32>
    tpu.vector_store %arg9[%c0_9, %c0_10], %18 {strides = array<i32>} : memref<8x64xf32, #tpu.memory_space<vmem>>, vector<8x64xf32>,
    %c0_11 = arith.constant 0 : index
    %c0_12 = arith.constant 0 : index
    %20 = vector.load %arg9[%c0_11, %c0_12] : memref<8x64xf32, #tpu.memory_space<vmem>>, vector<8x64xf32>
    %c0_13 = arith.constant 0 : index
    %c0_14 = arith.constant 0 : index
    %21 = vector.load %arg4[%c0_13, %c0_14] : memref<64x32xf32, #tpu.memory_space<vmem>>, vector<64x32xf32>
    %cst_15 = arith.constant dense<0.000000e+00> : vector<8x32xf32>
    %22 = tpu.matmul %20, %21, %cst_15 {dimension_numbers = #tpu.dot_dimension_numbers<[1], [0], [0], [1], [0, 0, 1, 1], [], []>} : vector<8x64xf32>, vector<64x32xf32>, vector<8x32xf32> -> vector<8x32xf32>
    %c0_16 = arith.constant 0 : index
    %c0_17 = arith.constant 0 : index
    %23 = vector.load %arg5[%c0_16, %c0_17] : memref<1x32xf32, #tpu.memory_space<vmem>>, vector<1x32xf32>
    %24 = vector.broadcast %23 : vector<1x32xf32> to vector<8x32xf32>
    %25 = arith.addf %22, %24 : vector<8x32xf32>
    %26 = arith.addf %25, %0 : vector<8x32xf32>
    %cst_18 = arith.constant dense<0.000000e+00> : vector<8xf32>
    %27 = vector.multi_reduction <add>, %26, %cst_18 [1] : vector<8x32xf32> to vector<8xf32>
    %28 = vector.shape_cast %27 : vector<8xf32> to vector<8x1xf32>
    %cst_19 = arith.constant 3.200000e+01 : f32
    %29 = vector.broadcast %cst_19 : f32 to vector<8x1xf32>
    %30 = arith.divf %28, %29 : vector<8x1xf32>
    %31 = vector.broadcast %30 : vector<8x1xf32> to vector<8x32xf32>
    %32 = arith.subf %26, %31 : vector<8x32xf32>
    %33 = arith.mulf %32, %32 : vector<8x32xf32>
    %cst_20 = arith.constant dense<0.000000e+00> : vector<8xf32>
    %34 = vector.multi_reduction <add>, %33, %cst_20 [1] : vector<8x32xf32> to vector<8xf32>
    %35 = vector.shape_cast %34 : vector<8xf32> to vector<8x1xf32>
    %cst_21 = arith.constant 3.200000e+01 : f32
    %36 = vector.broadcast %cst_21 : f32 to vector<8x1xf32>
    %37 = arith.divf %35, %36 : vector<8x1xf32>
    %38 = vector.broadcast %30 : vector<8x1xf32> to vector<8x32xf32>
    %39 = arith.subf %26, %38 : vector<8x32xf32>
    %cst_22 = arith.constant 9.99999996E-13 : f32
    %40 = vector.broadcast %cst_22 : f32 to vector<8x1xf32>
    %41 = arith.addf %37, %40 : vector<8x1xf32>
    %42 = math.rsqrt %41 : vector<8x1xf32>
    %43 = vector.broadcast %42 : vector<8x1xf32> to vector<8x32xf32>
    %44 = arith.mulf %39, %43 : vector<8x32xf32>
    %c0_23 = arith.constant 0 : index
    %c0_24 = arith.constant 0 : index
    %45 = vector.load %arg6[%c0_23, %c0_24] : memref<1x32xf32, #tpu.memory_space<vmem>>, vector<1x32xf32>
    %46 = vector.broadcast %45 : vector<1x32xf32> to vector<8x32xf32>
    %47 = arith.mulf %44, %46 : vector<8x32xf32>
    %c0_25 = arith.constant 0 : index
    %c0_26 = arith.constant 0 : index
    %48 = vector.load %arg7[%c0_25, %c0_26] : memref<1x32xf32, #tpu.memory_space<vmem>>, vector<1x32xf32>
    %49 = vector.broadcast %48 : vector<1x32xf32> to vector<8x32xf32>
    %50 = arith.addf %47, %49 : vector<8x32xf32>
    %c0_27 = arith.constant 0 : index
    %c0_28 = arith.constant 0 : index
    %51 = vector.load %arg8[%c0_27, %c0_28] : memref<8x32xf32, #tpu.memory_space<vmem>>, vector<8x32xf32>
    tpu.vector_store %arg8[%c0_27, %c0_28], %50 {strides = array<i32>} : memref<8x32xf32, #tpu.memory_space<vmem>>, vector<8x32xf32>,
    return
  }
  func.func @transform_0(%arg0: i32) -> (i32, i32) {
    %c0_i32 = arith.constant 0 : i32
    %c0_i32_0 = arith.constant 0 : i32
    return %arg0, %c0_i32 : i32, i32
  }
  func.func @transform_1(%arg0: i32) -> (i32, i32) {
    %c0_i32 = arith.constant 0 : i32
    %c0_i32_0 = arith.constant 0 : i32
    %c0_i32_1 = arith.constant 0 : i32
    return %c0_i32, %c0_i32_0 : i32, i32
  }
  func.func @transform_2(%arg0: i32) -> (i32, i32) {
    %c0_i32 = arith.constant 0 : i32
    %c0_i32_0 = arith.constant 0 : i32
    %c0_i32_1 = arith.constant 0 : i32
    return %c0_i32, %c0_i32_0 : i32, i32
  }
  func.func @transform_3(%arg0: i32) -> (i32, i32) {
    %c0_i32 = arith.constant 0 : i32
    %c0_i32_0 = arith.constant 0 : i32
    %c0_i32_1 = arith.constant 0 : i32
    return %c0_i32, %c0_i32_0 : i32, i32
  }
  func.func @transform_4(%arg0: i32) -> (i32, i32) {
    %c0_i32 = arith.constant 0 : i32
    %c0_i32_0 = arith.constant 0 : i32
    %c0_i32_1 = arith.constant 0 : i32
    return %c0_i32, %c0_i32_0 : i32, i32
  }
  func.func @transform_5(%arg0: i32) -> (i32, i32) {
    %c0_i32 = arith.constant 0 : i32
    %c0_i32_0 = arith.constant 0 : i32
    %c0_i32_1 = arith.constant 0 : i32
    return %c0_i32, %c0_i32_0 : i32, i32
  }
  func.func @transform_6(%arg0: i32) -> (i32, i32) {
    %c0_i32 = arith.constant 0 : i32
    %c0_i32_0 = arith.constant 0 : i32
    %c0_i32_1 = arith.constant 0 : i32
    return %c0_i32, %c0_i32_0 : i32, i32
  }
  func.func @transform_7(%arg0: i32) -> (i32, i32) {
    %c0_i32 = arith.constant 0 : i32
    %c0_i32_0 = arith.constant 0 : i32
    return %arg0, %c0_i32 : i32, i32
  }
}

module attributes {stable_mosaic.version = 11 : i64} {
  func.func @_head_kernel(%arg0: i32, %arg1: i32, %arg2: memref<8x32xf32, #tpu.memory_space<vmem>>, %arg3: memref<32x128xf32, #tpu.memory_space<vmem>>, %arg4: memref<1x128xf32, #tpu.memory_space<vmem>>, %arg5: memref<8x128xf32, #tpu.memory_space<vmem>>, %arg6: memref<8x128xf32, #tpu.memory_space<vmem>>) attributes {dimension_semantics = [#tpu.dimension_semantics<parallel>, #tpu.dimension_semantics<arbitrary>], iteration_bounds = array<i64: 2, 1>, scalar_prefetch = 0 : i64, scratch_operands = 1 : i64, tpu.core_type = #tpu.core_type<tc>, window_params = [{transform_indices = @transform_0, window_bounds = array<i64: 8, 32>}, {transform_indices = @transform_1, window_bounds = array<i64: 32, 128>}, {pipeline_mode = #tpu.pipeline_mode<synchronous>, transform_indices = @transform_2, window_bounds = array<i64: 1, 128>}, {transform_indices = @transform_3, window_bounds = array<i64: 8, 128>}]} {
    %c0_i32 = arith.constant 0 : i32
    %0 = arith.cmpi eq, %arg1, %c0_i32 : i32
    %1 = arith.extui %0 : i1 to i32
    %c0_i32_0 = arith.constant 0 : i32
    %2 = arith.cmpi ne, %1, %c0_i32_0 : i32
    scf.if %2 {
      %cst_10 = arith.constant 0.000000e+00 : f32
      %12 = vector.broadcast %cst_10 : f32 to vector<8x128xf32>
      %c0_11 = arith.constant 0 : index
      %c0_12 = arith.constant 0 : index
      %13 = vector.load %arg6[%c0_11, %c0_12] : memref<8x128xf32, #tpu.memory_space<vmem>>, vector<8x128xf32>
      tpu.vector_store %arg6[%c0_11, %c0_12], %12 {strides = array<i32>} : memref<8x128xf32, #tpu.memory_space<vmem>>, vector<8x128xf32>,
    } else {
    }
    %c0 = arith.constant 0 : index
    %c0_1 = arith.constant 0 : index
    %3 = vector.load %arg6[%c0, %c0_1] : memref<8x128xf32, #tpu.memory_space<vmem>>, vector<8x128xf32>
    %c0_2 = arith.constant 0 : index
    %c0_3 = arith.constant 0 : index
    %4 = vector.load %arg2[%c0_2, %c0_3] : memref<8x32xf32, #tpu.memory_space<vmem>>, vector<8x32xf32>
    %c0_4 = arith.constant 0 : index
    %c0_5 = arith.constant 0 : index
    %5 = vector.load %arg3[%c0_4, %c0_5] : memref<32x128xf32, #tpu.memory_space<vmem>>, vector<32x128xf32>
    %cst = arith.constant dense<0.000000e+00> : vector<8x128xf32>
    %6 = tpu.matmul %4, %5, %cst {dimension_numbers = #tpu.dot_dimension_numbers<[1], [0], [0], [1], [0, 0, 1, 1], [], []>} : vector<8x32xf32>, vector<32x128xf32>, vector<8x128xf32> -> vector<8x128xf32>
    %7 = arith.addf %3, %6 : vector<8x128xf32>
    %c0_6 = arith.constant 0 : index
    %c0_7 = arith.constant 0 : index
    %8 = vector.load %arg6[%c0_6, %c0_7] : memref<8x128xf32, #tpu.memory_space<vmem>>, vector<8x128xf32>
    tpu.vector_store %arg6[%c0_6, %c0_7], %7 {strides = array<i32>} : memref<8x128xf32, #tpu.memory_space<vmem>>, vector<8x128xf32>,
    %c0_i32_8 = arith.constant 0 : i32
    %9 = arith.cmpi eq, %arg1, %c0_i32_8 : i32
    %10 = arith.extui %9 : i1 to i32
    %c0_i32_9 = arith.constant 0 : i32
    %11 = arith.cmpi ne, %10, %c0_i32_9 : i32
    scf.if %11 {
      %c0_10 = arith.constant 0 : index
      %c0_11 = arith.constant 0 : index
      %12 = vector.load %arg6[%c0_10, %c0_11] : memref<8x128xf32, #tpu.memory_space<vmem>>, vector<8x128xf32>
      %c0_12 = arith.constant 0 : index
      %c0_13 = arith.constant 0 : index
      %13 = vector.load %arg4[%c0_12, %c0_13] : memref<1x128xf32, #tpu.memory_space<vmem>>, vector<1x128xf32>
      %14 = vector.broadcast %13 : vector<1x128xf32> to vector<8x128xf32>
      %15 = arith.addf %12, %14 : vector<8x128xf32>
      %c0_14 = arith.constant 0 : index
      %c0_15 = arith.constant 0 : index
      %16 = vector.load %arg5[%c0_14, %c0_15] : memref<8x128xf32, #tpu.memory_space<vmem>>, vector<8x128xf32>
      tpu.vector_store %arg5[%c0_14, %c0_15], %15 {strides = array<i32>} : memref<8x128xf32, #tpu.memory_space<vmem>>, vector<8x128xf32>,
    } else {
    }
    return
  }
  func.func @transform_0(%arg0: i32, %arg1: i32) -> (i32, i32) {
    %c0_i32 = arith.constant 0 : i32
    return %arg0, %arg1 : i32, i32
  }
  func.func @transform_1(%arg0: i32, %arg1: i32) -> (i32, i32) {
    %c0_i32 = arith.constant 0 : i32
    %c0_i32_0 = arith.constant 0 : i32
    return %arg1, %c0_i32 : i32, i32
  }
  func.func @transform_2(%arg0: i32, %arg1: i32) -> (i32, i32) {
    %c0_i32 = arith.constant 0 : i32
    %c0_i32_0 = arith.constant 0 : i32
    %c0_i32_1 = arith.constant 0 : i32
    return %c0_i32, %c0_i32_0 : i32, i32
  }
  func.func @transform_3(%arg0: i32, %arg1: i32) -> (i32, i32) {
    %c0_i32 = arith.constant 0 : i32
    %c0_i32_0 = arith.constant 0 : i32
    return %arg0, %c0_i32 : i32, i32
  }
}

</mosaic_0001>

<bundles_post_ra>
// kernel: bert_for_sequence_labeling.6
= control target key start
LH: loop header
LB: loop body
LE: loop exit
PB: predicated region body
PF: predicated region fallthrough
CT: control target
= control target key end

     0   :  { %s429_s18 = smov 0   ;;  %s467_s0 = inlined_call_operand.vmem [shape: f32[16,32], index: 0, kind: input, shape index: {}]   ;;  %s468_s1 = inlined_call_operand.vmem [shape: f32[16,32], index: 1, kind: input, shape index: {}]   ;;  %s469_s2 = inlined_call_operand.vmem [shape: f32[16,32], index: 2, kind: input, shape index: {}]   ;;  %s470_s3 = inlined_call_operand.vmem [shape: f32[1,32], index: 3, kind: input, shape index: {}]   ;;  %s471_s4 = inlined_call_operand.vmem [shape: f32[1,32], index: 4, kind: input, shape index: {}]   ;;  %s472_s5 = inlined_call_operand.vmem [shape: f32[16,32], index: 5, kind: output, shape index: {}]  }
   0x1 LB: > { %s368_s19 = sadd.s32 4294967295, %s397_s18   ;;  %p372_p0 = scmp.ge.s32.totalorder %s397_s18, 1  ;;  %s397_s18 = sphi %s429_s18, %s15_s18  }
   0x2   : > { %p204_p1 = scmp.lt.s32.totalorder %s397_s18, 3 }
   0x4   : > { %p205_p2 = pnand %p372_p0, %p204_p1 }
   0x5   : > { %p238_p3 = scmp.lt.s32.totalorder (!%p205_p2), %s368_s19, 1 }
   0x6   : > { %208 = sbr.rel (%p205_p2) target bundleno = 329 (0x149), region = 40 }
   0xb   : > { %s474_s19 = smov (!%p238_p3, %s368_s19), 1  ;;  %vm259_vm0 = vcmask 261120   ;;  %v377_v15 = vld [vmem:[%s470_s3] ss:$0 sm:$0xff] }
   0xc   : > { %s437_s20 = sshll.u32 %s474_s19, 3  ;;  %v378_v17 = vld [vmem:[%s471_s4] ss:$0 sm:$0xff] }
   0xd   : > { %s241_s23 = scalar_lea.vmem %s467_s0, %s437_s20  ;;  %s245_s26 = scalar_lea.vmem %s468_s1, %s437_s20 }
   0xe   : > { %s249_s29 = scalar_lea.vmem %s469_s2, %s437_s20  ;;  %v254_v0 = vld [vmem:[%s241_s23] sm:$0xff]  ;;  %s253_s11 = scalar_lea.vmem %s472_s5, %s437_s20 }
   0xf   : > { %v255_v1 = vld [vmem:[%s245_s26] sm:$0xff] }
  0x10   : > { %v256_v2 = vadd.f32 %v255_v1, %v254_v0  ;;  %v257_v3 = vld [vmem:[%s249_s29] sm:$0xff] }
  0x12   : > { %v258_v4 = vadd.f32 %v257_v3, %v256_v2 }
  0x14   : > { %v260_v5 = vsel %vm259_vm0, %v258_v4, 0.0 }
  0x15   : > { %261 = vadd.xlane.f32.xlu0 %v260_v5 }
  0x9e   : > { %v262_v6 = vpop.xlane.xlu0 %261 }
  0x9f   : > { %v264_v7 = vmul.f32 0.03125, %v262_v6 }
  0xa1   : > { %v265_v8 = vsub.f32 %v258_v4, %v264_v7 }
  0xa3   : > { %v266_v9 = vmul.f32 %v265_v8, %v265_v8 }
  0xa5   : > { %v267_v10 = vsel %vm259_vm0, %v266_v9, 0.0 }
  0xa6   : > { %268 = vadd.xlane.f32.xlu0 %v267_v10 }
 0x12f   : > { %v269_v11 = vpop.xlane.xlu0 %268 }
 0x130   : > { %v270_v12 = vmul.f32 0.03125, %v269_v11 }
 0x132   : > { %v271_v13 = vadd.f32 1e-12, %v270_v12 }
 0x134   : > { %389 = vrsqrt.f32 %v271_v13 }
 0x141   : > { %v390_v14 = vpop.eup %389 }
 0x142   : > { %v273_v16 = vmul.f32 %v390_v14, %v265_v8 }
 0x144   : > { %v281_v18 = vmul.f32 %v377_v15, %v273_v16 }
 0x146   : > { %v289_v19 = vadd.f32 %v378_v17, %v281_v18 }
 0x148   : > { %290 = vst.msk [vmem:[%s253_s11] sm:$0xff] %vm259_vm0, %v289_v19 }
 0x149 PF: > { %s15_s18 = sadd.s32 1, %s397_s18  }
 0x14a   : > { %p12_p4 = scmp.ge.s32.totalorder %s15_s18, 4  }
 0x14c   :  { %14 = sbr.rel (!%p12_p4) target bundleno = 1 (0x1), region = 76 }

// kernel: bert_for_sequence_labeling.11
= control target key start
LH: loop header
LB: loop body
LE: loop exit
PB: predicated region body
PF: predicated region fallthrough
CT: control target
= control target key end

     0   :  { %s491_s12 = smov 0   ;;  %s493_s13 = smov 0   ;;  %s539_s0 = inlined_call_operand.vmem [shape: f32[16,32], index: 0, kind: input, shape index: {}]   ;;  %s540_s1 = inlined_call_operand.vmem [shape: f32[32,128], index: 1, kind: input, shape index: {}]   ;;  %s541_s2 = inlined_call_operand.vmem [shape: f32[1,128], index: 2, kind: input, shape index: {}]   ;;  %s542_s3 = inlined_call_operand.vmem [shape: f32[16,128], index: 3, kind: output, shape index: {}]  }
   0x1   :  { %s495_s14 = smov 0  }
   0x2 LB: > { %s25_s15 = sadd.s32 1, %s463_s13  ;;  %p396_p0 = scmp.ge.s32.totalorder %s467_s14, 1  ;;  %s467_s14 = sphi %s495_s14, %s13_s14   ;;  %s463_s13 = sphi %s493_s13, %s544_s13   ;;  %s459_s12 = sphi %s491_s12, %s543_s12  }
   0x3   : > { %p27_p1 = scmp.ge.s32.totalorder %s25_s15, 2  ;;  %p164_p2 = scmp.lt.s32.totalorder %s467_s14, 3 }
   0x5   : > { %s546_s15 = smov (%p27_p1, %s25_s15), 0  ;;  %p165_p3 = pnand %p396_p0, %p164_p2 }
   0x6   : > { %p194_p4 = scmp.lt.s32.totalorder (!%p165_p3), %s459_s12, 1 }
   0x7   : > { %168 = sbr.rel (%p165_p3) target bundleno = 217 (0xd9), region = 32 }
   0xc   : > { %v221_v0 = vld [vmem:[%s540_s1 + $0x18] sm:$0xff]  ;;  %v469_v1 = vmov 0.0   ;;  %v220_v2 = vld [vmem:[%s540_s1 + $0x10] sm:$0xff]  ;;  %vm470_vm0 = vmmov 0   ;;  %s548_s12 = smov (!%p194_p4, %s459_s12), 1  ;;  %v219_v3 = vld [vmem:[%s540_s1 + $0x8] sm:$0xff] }
   0xd   : > { %408 = vmatprep.subr.mxu0 %v469_v1  ;;  %416 = vmatprep.mubr.msk.f32.mxu0 %vm470_vm0, %v469_v1  ;;  %s397_s22 = sshll.u32 %s548_s12, 3  ;;  %v218_v4 = vld [vmem:[%s540_s1] sm:$0xff]  ;;  %vm222_vm1 = vcmask 261120  }
   0xe   : > { %409 = vmatpush3.msra.mxu0 %v221_v0  ;;  %s200_s27 = scalar_lea.vmem %s539_s0, %s397_s22  ;;  %v400_v6 = vld [vmem:[%s541_s2] ss:$0 sm:$0xff]  ;;  %s210_s5 = scalar_lea.vmem %s542_s3, %s397_s22 }
   0xf   : > { %410 = vmatprep.subr.mxu0 %v469_v1  ;;  %v217_v5 = vld [vmem:[%s200_s27] sm:$0xff] }
  0x10   : > { %411 = vmatpush3.msra.mxu0 %v220_v2 }
  0x11   : > { %412 = vmatprep.subr.mxu0 %v469_v1 }
  0x12   : > { %413 = vmatpush3.msra.mxu0 %v219_v3 }
  0x13   : > { %414 = vmatprep.subr.mxu0 %v469_v1 }
  0x14   : > { %415 = vmatpush3.msra.mxu0 %v218_v4 }
  0x15   : > { %417 = vmatmul.mubr.msk.f32.vlgmr.msra.gmra.mxu0 %vm222_vm1, %v217_v5 }
  0xd5   : > { %v292_v7 = vpop.f32.mrf.mxu0 }
  0xd6   : > { %v309_v8 = vadd.f32 %v400_v6, %v292_v7 }
  0xd7   : > { %v418_v9 = vpop.f32.mrf.mxu0 }
  0xd8   : > { %310 = vst [vmem:[%s210_s5] sm:$0xff] %v309_v8 }
  0xd9 PF: > { %s13_s14 = sadd.s32 1, %s467_s14   ;;  %s543_s12 = smov %s463_s13 }
  0xda   : > { %p10_p5 = scmp.ge.s32.totalorder %s13_s14, 4   ;;  %s544_s13 = smov %s546_s15 }
  0xdc   :  { %12 = sbr.rel (!%p10_p5) target bundleno = 2 (0x2), region = 73 }

// kernel: bert_for_sequence_labeling.8
= control target key start
LH: loop header
LB: loop body
LE: loop exit
PB: predicated region body
PF: predicated region fallthrough
CT: control target
= control target key end

     0   :  { %s668_s24 = smov 0   ;;  %s744_s0 = inlined_call_operand.vmem [shape: f32[16,32], index: 0, kind: input, shape index: {}]   ;;  %s745_s1 = inlined_call_operand.vmem [shape: f32[32,64], index: 1, kind: input, shape index: {}]   ;;  %s746_s2 = inlined_call_operand.vmem [shape: f32[1,64], index: 2, kind: input, shape index: {}]   ;;  %s747_s3 = inlined_call_operand.vmem [shape: f32[64,32], index: 3, kind: input, shape index: {}]   ;;  %s748_s4 = inlined_call_operand.vmem [shape: f32[1,32], index: 4, kind: input, shape index: {}]   ;;  %s749_s5 = inlined_call_operand.vmem [shape: f32[1,32], index: 5, kind: input, shape index: {}]   ;;  %s750_s6 = inlined_call_operand.vmem [shape: f32[1,32], index: 6, kind: input, shape index: {}]   ;;  %s751_s7 = inlined_call_operand.vmem [shape: f32[16,32], index: 7, kind: output, shape index: {}]  }
   0x1 LB: > { %s545_s25 = sadd.s32 4294967295, %s624_s24   ;;  %p549_p0 = scmp.ge.s32.totalorder %s624_s24, 1  ;;  %s624_s24 = sphi %s668_s24, %s17_s24  }
   0x2   : > { %p236_p1 = scmp.lt.s32.totalorder %s624_s24, 3 }
   0x4   : > { %p237_p2 = pnand %p549_p0, %p236_p1 }
   0x5   : > { %p266_p3 = scmp.lt.s32.totalorder (!%p237_p2), %s545_s25, 1 }
   0x6   : > { %240 = sbr.rel (%p237_p2) target bundleno = 757 (0x2f5), region = 48 }
   0xb   : > { %v278_v0 = vld [vmem:[%s745_s1 + $0x18] sm:$0xff]  ;;  %v626_v1 = vmov 0.0   ;;  %v277_v2 = vld [vmem:[%s745_s1 + $0x10] sm:$0xff]  ;;  %vm627_vm0 = vmmov 0   ;;  %s753_s25 = smov (!%p266_p3, %s545_s25), 1  ;;  %v276_v3 = vld [vmem:[%s745_s1 + $0x8] sm:$0xff] }
   0xc   : > { %574 = vmatprep.subr.mxu0 %v626_v1  ;;  %582 = vmatprep.mubr.msk.f32.mxu0 %vm627_vm0, %v626_v1  ;;  %s550_s9 = sshll.u32 %s753_s25, 3  ;;  %v275_v4 = vld [vmem:[%s745_s1] sm:$0xff]  ;;  %vm286_vm1 = vcmask 261120   ;;  %v379_v6 = vld [vmem:[%s747_s3 + $0x38] sm:$0xff]  ;;  %v378_v7 = vld [vmem:[%s747_s3 + $0x30] sm:$0xff]  ;;  %vm369_vm2 = vcmask 523264  }
   0xd   : > { %575 = vmatpush3.msra.mxu0 %v278_v0  ;;  %585 = vmatprep.subr.mxu1 %v626_v1  ;;  %s269_s14 = scalar_lea.vmem %s744_s0, %s550_s9  ;;  %v377_v8 = vld [vmem:[%s747_s3 + $0x28] sm:$0xff]  ;;  %v376_v9 = vld [vmem:[%s747_s3 + $0x20] sm:$0xff]  ;;  %v375_v10 = vld [vmem:[%s747_s3 + $0x18] sm:$0xff]  ;;  %s273_s21 = scalar_lea.vmem %s751_s7, %s550_s9 }
   0xe   : > { %576 = vmatprep.subr.mxu0 %v626_v1  ;;  %601 = vmatprep.mubr.msk.f32.mxu1 %vm627_vm0, %v626_v1  ;;  %v274_v5 = vld [vmem:[%s269_s14] sm:$0xff]  ;;  %v374_v11 = vld [vmem:[%s747_s3 + $0x10] sm:$0xff]  ;;  %v373_v12 = vld [vmem:[%s747_s3 + $0x8] sm:$0xff] }
   0xf   : > { %577 = vmatpush3.msra.mxu0 %v277_v2  ;;  %586 = vmatpush3.msra.mxu1 %v379_v6  ;;  %v372_v13 = vld [vmem:[%s747_s3] sm:$0xff] }
  0x10   : > { %578 = vmatprep.subr.mxu0 %v626_v1  ;;  %587 = vmatprep.subr.mxu1 %v626_v1  ;;  %v552_v14 = vld [vmem:[%s746_s2] ss:$0 sm:$0xff] }
  0x11   : > { %579 = vmatpush3.msra.mxu0 %v276_v3  ;;  %588 = vmatpush3.msra.mxu1 %v378_v7  ;;  %v554_v28 = vld [vmem:[%s748_s4] ss:$0 sm:$0xff] }
  0x12   : > { %580 = vmatprep.subr.mxu0 %v626_v1  ;;  %589 = vmatprep.subr.mxu1 %v626_v1  ;;  %v556_v43 = vld [vmem:[%s749_s5] ss:$0 sm:$0xff] }
  0x13   : > { %581 = vmatpush3.msra.mxu0 %v275_v4  ;;  %590 = vmatpush3.msra.mxu1 %v377_v8  ;;  %v557_v45 = vld [vmem:[%s750_s6] ss:$0 sm:$0xff] }
  0x14   : > { %583 = vmatmul.mubr.msk.f32.vlgmr.msra.gmra.mxu0 %vm286_vm1, %v274_v5  ;;  %591 = vmatprep.subr.mxu1 %v626_v1 }
  0x15   : > { %592 = vmatpush3.msra.mxu1 %v376_v9 }
  0x16   : > { %593 = vmatprep.subr.mxu1 %v626_v1 }
  0x17   : > { %594 = vmatpush3.msra.mxu1 %v375_v10 }
  0x18   : > { %595 = vmatprep.subr.mxu1 %v626_v1 }
  0x19   : > { %596 = vmatpush3.msra.mxu1 %v374_v11 }
  0x1a   : > { %597 = vmatprep.subr.mxu1 %v626_v1 }
  0x1b   : > { %598 = vmatpush3.msra.mxu1 %v373_v12 }
  0x1c   : > { %599 = vmatprep.subr.mxu1 %v626_v1 }
  0x1d   : > { %600 = vmatpush3.msra.mxu1 %v372_v13 }
  0xd4   : > { %v356_v15 = vpop.f32.mrf.mxu0 }
  0xd5   : > { %v357_v16 = vadd.f32 %v552_v14, %v356_v15 }
  0xd6   : > { %v584_v17 = vpop.f32.mrf.mxu0 }
  0xd7   : > { %v361_v18 = vmul.f32 0.044715, %v357_v16  ;;  %v360_v24 = vmul.f32 0.5, %v357_v16 }
  0xd9   : > { %v362_v19 = vmul.f32 %v361_v18, %v357_v16 }
  0xdb   : > { %v363_v20 = vmul.f32 %v362_v19, %v357_v16 }
  0xdd   : > { %v364_v21 = vadd.f32 %v363_v20, %v357_v16 }
  0xdf   : > { %v365_v22 = vmul.f32 0.7978846, %v364_v21 }
  0xe1   : > { %614 = vtanh.f32 %v365_v22 }
  0xee   : > { %v615_v23 = vpop.eup %614 }
  0xef   : > { %v367_v25 = vadd.f32 1.0, %v615_v23 }
  0xf1   : > { %v368_v26 = vmul.f32 %v367_v25, %v360_v24 }
  0xf3   : > { %370 = vst.msk [vmem:[#allocation2] sm:$0xff] %vm369_vm2, %v368_v26 }
  0xfa   : > { %v371_v27 = vld [vmem:[#allocation2] sm:$0xff] }
  0xfb   : > { %602 = vmatmul.mubr.msk.f32.vlgmr.msra.gmra.mxu1 %vm369_vm2, %v371_v27 }
 0x1bb   : > { %v456_v29 = vpop.f32.mrf.mxu1 }
 0x1bc   : > { %v457_v30 = vadd.f32 %v554_v28, %v456_v29 }
 0x1bd   : > { %v603_v31 = vpop.f32.mrf.mxu1 }
 0x1be   : > { %v460_v32 = vadd.f32 %v457_v30, %v274_v5 }
 0x1c0   : > { %v461_v33 = vsel %vm286_vm1, %v460_v32, 0.0 }
 0x1c1   : > { %462 = vadd.xlane.f32.xlu0 %v461_v33 }
 0x24a   : > { %v463_v34 = vpop.xlane.xlu0 %462 }
 0x24b   : > { %v465_v35 = vmul.f32 0.03125, %v463_v34 }
 0x24d   : > { %v466_v36 = vsub.f32 %v460_v32, %v465_v35 }
 0x24f   : > { %v467_v37 = vmul.f32 %v466_v36, %v466_v36 }
 0x251   : > { %v468_v38 = vsel %vm286_vm1, %v467_v37, 0.0 }
 0x252   : > { %469 = vadd.xlane.f32.xlu0 %v468_v38 }
 0x2db   : > { %v470_v39 = vpop.xlane.xlu0 %469 }
 0x2dc   : > { %v471_v40 = vmul.f32 0.03125, %v470_v39 }
 0x2de   : > { %v472_v41 = vadd.f32 1e-12, %v471_v40 }
 0x2e0   : > { %616 = vrsqrt.f32 %v472_v41 }
 0x2ed   : > { %v617_v42 = vpop.eup %616 }
 0x2ee   : > { %v474_v44 = vmul.f32 %v617_v42, %v466_v36 }
 0x2f0   : > { %v482_v46 = vmul.f32 %v556_v43, %v474_v44 }
 0x2f2   : > { %v490_v47 = vadd.f32 %v557_v45, %v482_v46 }
 0x2f4   : > { %491 = vst.msk [vmem:[%s273_s21] sm:$0xff] %vm286_vm1, %v490_v47 }
 0x2f5 PF: > { %s17_s24 = sadd.s32 1, %s624_s24  }
 0x2f6   : > { %p14_p4 = scmp.ge.s32.totalorder %s17_s24, 4  }
 0x2f8   :  { %16 = sbr.rel (!%p14_p4) target bundleno = 1 (0x1), region = 78 }

// kernel: bert_for_sequence_labeling.7
= control target key start
LH: loop header
LB: loop body
LE: loop exit
PB: predicated region body
PF: predicated region fallthrough
CT: control target
= control target key end

     0   :  { %s1168_s27 = smov 0   ;;  %s1286_s0 = inlined_call_operand.vmem [shape: f32[2,8,32], index: 0, kind: input, shape index: {}]   ;;  %s1287_s1 = inlined_call_operand.vmem [shape: f32[32,96], index: 1, kind: input, shape index: {}]   ;;  %s1288_s2 = inlined_call_operand.vmem [shape: f32[1,96], index: 2, kind: input, shape index: {}]   ;;  %s1289_s3 = inlined_call_operand.vmem [shape: f32[32,32], index: 3, kind: input, shape index: {}]   ;;  %s1290_s4 = inlined_call_operand.vmem [shape: f32[1,32], index: 4, kind: input, shape index: {}]   ;;  %s1291_s5 = inlined_call_operand.vmem [shape: f32[1,32], index: 5, kind: input, shape index: {}]   ;;  %s1292_s6 = inlined_call_operand.vmem [shape: f32[1,32], index: 6, kind: input, shape index: {}]   ;;  %s1293_s7 = inlined_call_operand.vmem [shape: f32[2,1,8], index: 7, kind: input, shape index: {}]   ;;  %s1294_s8 = inlined_call_operand.vmem [shape: f32[2,8,32], index: 8, kind: output, shape index: {}]  }
   0x1 LB: > { %s996_s28 = sadd.s32 4294967295, %s1114_s27   ;;  %p1000_p0 = scmp.ge.s32.totalorder %s1114_s27, 1  ;;  %s1114_s27 = sphi %s1168_s27, %s18_s27  }
   0x2   : > { %p269_p1 = scmp.lt.s32.totalorder %s1114_s27, 3 }
   0x4   : > { %p270_p2 = pnand %p1000_p0, %p269_p1 }
   0x5   : > { %p304_p3 = scmp.lt.s32.totalorder (!%p270_p2), %s996_s28, 1  ;;  %s1118_s21 = smov (!%p270_p2), 64  }
   0x6   : > { %273 = sbr.rel (%p270_p2) target bundleno = 2054 (0x806), region = 52  ;;  %s1119_s22 = smov (!%p270_p2), 96  }
   0x7   : > { %s1120_s23 = smov (!%p270_p2), 80   ;;  %s1121_s29 = smov (!%p270_p2), 112  }
   0x8   : > { %s1122_s12 = smov (!%p270_p2), 48  }
   0xb   : > { %v319_v0 = vld [vmem:[%s1287_s1 + $0x18] sm:$0xff]  ;;  %v1116_v1 = vmov 0.0   ;;  %v318_v2 = vld [vmem:[%s1287_s1 + $0x10] sm:$0xff]  ;;  %vm1117_vm0 = vmmov 0   ;;  %s1296_s28 = smov (!%p304_p3, %s996_s28), 1  ;;  %v317_v3 = vld [vmem:[%s1287_s1 + $0x8] sm:$0xff] }
   0xc   : > { %1038 = vmatprep.subr.mxu0 %v1116_v1  ;;  %1046 = vmatprep.mubr.msk.f32.mxu0 %vm1117_vm0, %v1116_v1  ;;  %s1001_s13 = sshll.u32 %s1296_s28, 3  ;;  %v316_v4 = vld [vmem:[%s1287_s1] sm:$0xff]  ;;  %vm327_vm1 = vcmask 261120   ;;  %vm410_vm2 = vcmask 130048   ;;  %s310_s26 = scalar_lea.vmem %s1293_s7, %s1296_s28  ;;  %vm493_vm3 = vcmask 64512   ;;  %v403_v23 = vld [vmem:[%s1289_s3 + $0x8] sm:$0xff] }
   0xd   : > { %1039 = vmatpush3.msra.mxu0 %v319_v0  ;;  %1049 = vmatprep.subr.mxu1 %v1116_v1  ;;  %s307_s18 = scalar_lea.vmem %s1286_s0, %s1001_s13  ;;  %v1003_v6 = vld [vmem:[%s1288_s2] ss:$0 sm:$0xff]  ;;  %v405_v43 = vld [vmem:[%s1289_s3 + $0x18] sm:$0xff]  ;;  %v404_v44 = vld [vmem:[%s1289_s3 + $0x10] sm:$0xff] }
   0xe   : > { %1040 = vmatprep.subr.mxu0 %v1116_v1  ;;  %1051 = vmatprep.mubr.msk.f32.mxu1 %vm1117_vm0, %v1116_v1  ;;  %v1204_v5 = vld [vmem:[%s307_s18] sm:$0xff] }
   0xf   : > { %1041 = vmatpush3.msra.mxu0 %v318_v2  ;;  %v1007_v13 = vld [vmem:[%s310_s26] ss:$0 sm:$0xff]  ;;  %s314_s26 = scalar_lea.vmem %s1294_s8, %s1001_s13 }
  0x10   : > { %1042 = vmatprep.subr.mxu0 %v1116_v1  ;;  %v402_v29 = vld [vmem:[%s1289_s3] sm:$0xff] }
  0x11   : > { %1043 = vmatpush3.msra.mxu0 %v317_v3  ;;  %v1010_v52 = vld [vmem:[%s1290_s4] ss:$0 sm:$0xff] }
  0x12   : > { %1044 = vmatprep.subr.mxu0 %v1116_v1 }
  0x13   : > { %1045 = vmatpush3.msra.mxu0 %v316_v4  ;;  %v1015_v4 = vld [vmem:[%s1291_s5] ss:$0 sm:$0xff] }
  0x14   : > { %1047 = vmatmul.mubr.msk.f32.vlgmr.msra.gmra.mxu0 %vm327_vm1, %v1204_v5  ;;  %1059 = vmatprep.subr.mxu0 %v1116_v1 }
  0x15   : > { %1063 = vmatprep.mubr.msk.f32.mxu0 %vm1117_vm0, %v1116_v1  ;;  %1060 = vmatpush3.msra.mxu0 %v403_v23 }
  0x16   : > { %1061 = vmatprep.subr.mxu0 %v1116_v1 }
  0x17   : > { %1062 = vmatpush3.msra.mxu0 %v402_v29 }
  0x18   : > { %1071 = vmatprep.subr.mxu0 %v1116_v1 }
  0xd4   : > { %v397_v7 = vpop.f32.mrf.mxu0 }
  0xd5   : > { %v1215_v8 = vadd.f32 %v1003_v6, %v397_v7  ;;  %v1016_v6 = vld [vmem:[%s1292_s6] ss:$0 sm:$0xff] }
  0xd6   : > { %v1048_v9 = vpop.f32.mrf.mxu0 }
  0xd7   : > { %505 = vrot.lane.b32.xlu1 %v1215_v8, %s1118_s21  ;;  %408 = vrot.lane.b32.xlu0 %v1215_v8, %s1119_s22 }
  0xdb   : > { %663 = vrot.lane.b32.xlu1 %v1215_v8, %s1120_s23 }
 0x149   : > { %v409_v10 = vpop.permute.xlu0 %408  ;;  %v506_v11 = vpop.permute.xlu1 %505 }
 0x14a   : > { %1050 = vmatpush3.xpose.msk.msra.mxu1 %vm410_vm2, %v409_v10 }
 0x14b   : > { %1054 = vmatprep.subr.mxu1 %v1116_v1 }
 0x14d   : > { %1052 = vmatmul.mubr.msk.f32.vlgmr.msra.gmra.mxu1 %vm410_vm2, %v1215_v8  ;;  %v664_v24 = vpop.permute.xlu1 %663 }
 0x14e   : > { %1055 = vmatpush3.msra.mxu1 %v506_v11  ;;  %1056 = vmatprep.mubr.msk.f32.mxu1 %vm1117_vm0, %v1116_v1 }
 0x14f   : > { %1066 = vmatprep.subr.mxu1 %v1116_v1 }
 0x20d   : > { %v481_v12 = vpop.f32.mrf.mxu1 }
 0x20e   : > { %v485_v14 = vmul.f32 0.25, %v481_v12 }
 0x20f   : > { %v1053_v15 = vpop.f32.mrf.mxu1 }
 0x210   : > { %v492_v16 = vadd.f32 %v1007_v13, %v485_v14 }
 0x212   : > { %v494_v17 = vsel %vm493_vm3, %v492_v16, -inf }
 0x213   : > { %495 = vmax.xlane.f32.xlu0 %v494_v17 }
 0x29c   : > { %v496_v18 = vpop.xlane.xlu0 %495 }
 0x29d   : > { %v497_v19 = vsub.f32 %v492_v16, %v496_v18 }
 0x29f   : > { %v498_v20 = vmul.f32 1.442695, %v497_v19 }
 0x2a1   : > { %1098 = vpow2.f32 %v498_v20 }
 0x2ae   : > { %v1099_v21 = vpop.eup %1098 }
 0x2af   : > { %v500_v22 = vsel %vm493_vm3, %v1099_v21, 0.0 }
 0x2b0   : > { %501 = vadd.xlane.f32.xlu1 %v500_v22 }
 0x2c1   : > { %661 = vrot.lane.b32.xlu1 %v1215_v8, %s1121_s29 }
 0x339   : > { %v502_v25 = vpop.xlane.xlu1 %501 }
 0x33a   : > { %1100 = vrcp.f32 %v502_v25 }
 0x33d   : > { %v662_v28 = vpop.permute.xlu1 %661 }
 0x347   : > { %v1101_v26 = vpop.eup %1100 }
 0x348   : > { %v504_v27 = vmul.f32 %v1101_v26, %v1099_v21 }
 0x34a   : > { %1057 = vmatmul.mubr.msk.f32.vlgmr.msra.gmra.mxu1 %vm493_vm3, %v504_v27 }
 0x34b   : > { %1067 = vmatpush3.xpose.msk.msra.mxu1 %vm410_vm2, %v664_v24  ;;  %1068 = vmatprep.mubr.msk.f32.mxu1 %vm1117_vm0, %v1116_v1 }
 0x34c   : > { %1076 = vmatprep.subr.mxu1 %v1116_v1 }
 0x34e   : > { %1069 = vmatmul.mubr.msk.f32.vlgmr.msra.gmra.mxu1 %vm410_vm2, %v662_v28 }
 0x34f   : > { %1080 = vmatprep.mubr.msk.f32.mxu1 %vm1117_vm0, %v1116_v1  ;;  %1077 = vmatpush3.msra.mxu1 %v405_v43 }
 0x350   : > { %1078 = vmatprep.subr.mxu1 %v1116_v1 }
 0x351   : > { %1079 = vmatpush3.msra.mxu1 %v404_v44 }
 0x40a   : > { %v577_v30 = vpop.f32.mrf.mxu1 }
 0x40b   : > { %1064 = vmatmul.mubr.msk.f32.vlgmr.msra.gmra.mxu0 %vm410_vm2, %v577_v30 }
 0x40c   : > { %v1058_v31 = vpop.f32.mrf.mxu1  ;;  %1073 = vmatprep.mubr.msk.f32.mxu0 %vm1117_vm0, %v1116_v1 }
 0x40e   : > { %v735_v32 = vpop.f32.mrf.mxu1 }
 0x40f   : > { %v739_v33 = vmul.f32 0.25, %v735_v32 }
 0x410   : > { %v1070_v34 = vpop.f32.mrf.mxu1 }
 0x411   : > { %v740_v35 = vadd.f32 %v1007_v13, %v739_v33 }
 0x413   : > { %v741_v36 = vsel %vm493_vm3, %v740_v35, -inf }
 0x414   : > { %742 = vmax.xlane.f32.xlu1 %v741_v36 }
 0x49d   : > { %v743_v37 = vpop.xlane.xlu1 %742 }
 0x49e   : > { %v744_v38 = vsub.f32 %v740_v35, %v743_v37 }
 0x4a0   : > { %v745_v39 = vmul.f32 1.442695, %v744_v38 }
 0x4a2   : > { %1102 = vpow2.f32 %v745_v39 }
 0x4af   : > { %v1103_v40 = vpop.eup %1102 }
 0x4b0   : > { %v747_v41 = vsel %vm493_vm3, %v1103_v40, 0.0 }
 0x4b1   : > { %748 = vadd.xlane.f32.xlu0 %v747_v41 }
 0x4c7   : > { %752 = vrot.lane.b32.xlu0 %v1215_v8, %s1122_s12 }
 0x4cb   : > { %v650_v42 = vpop.f32.mrf.mxu0 }
 0x4cc   : > { %v660_v53 = vadd.f32 %v1010_v52, %v650_v42 }
 0x4cd   : > { %v1065_v45 = vpop.f32.mrf.mxu0 }
 0x53a   : > { %v749_v46 = vpop.xlane.xlu0 %748 }
 0x53b   : > { %1104 = vrcp.f32 %v749_v46 }
 0x53e   : > { %v753_v47 = vpop.permute.xlu0 %752 }
 0x53f   : > { %1072 = vmatpush3.msra.mxu0 %v753_v47 }
 0x548   : > { %v1105_v48 = vpop.eup %1104 }
 0x549   : > { %v751_v49 = vmul.f32 %v1105_v48, %v1103_v40 }
 0x54b   : > { %1074 = vmatmul.mubr.msk.f32.vlgmr.msra.gmra.mxu0 %vm493_vm3, %v751_v49 }
 0x60b   : > { %v824_v50 = vpop.f32.mrf.mxu0 }
 0x60c   : > { %1081 = vmatmul.mubr.msk.f32.vlgmr.msra.gmra.mxu1 %vm410_vm2, %v824_v50 }
 0x60d   : > { %v1075_v51 = vpop.f32.mrf.mxu0 }
 0x6cc   : > { %v897_v54 = vpop.f32.mrf.mxu1 }
 0x6cd   : > { %v901_v55 = vadd.f32 %v897_v54, %v660_v53 }
 0x6ce   : > { %v1082_v56 = vpop.f32.mrf.mxu1 }
 0x6cf   : > { %v902_v57 = vadd.f32 %v901_v55, %v1204_v5 }
 0x6d1   : > { %v903_v58 = vsel %vm327_vm1, %v902_v57, 0.0 }
 0x6d2   : > { %904 = vadd.xlane.f32.xlu0 %v903_v58 }
 0x75b   : > { %v905_v59 = vpop.xlane.xlu0 %904 }
 0x75c   : > { %v907_v60 = vmul.f32 0.03125, %v905_v59 }
 0x75e   : > { %v908_v61 = vsub.f32 %v902_v57, %v907_v60 }
 0x760   : > { %v909_v62 = vmul.f32 %v908_v61, %v908_v61 }
 0x762   : > { %v910_v63 = vsel %vm327_vm1, %v909_v62, 0.0 }
 0x763   : > { %911 = vadd.xlane.f32.xlu1 %v910_v63 }
 0x7ec   : > { %v912_v0 = vpop.xlane.xlu1 %911 }
 0x7ed   : > { %v913_v1 = vmul.f32 0.03125, %v912_v0 }
 0x7ef   : > { %v914_v2 = vadd.f32 1e-12, %v913_v1 }
 0x7f1   : > { %1106 = vrsqrt.f32 %v914_v2 }
 0x7fe   : > { %v1107_v3 = vpop.eup %1106 }
 0x7ff   : > { %v916_v5 = vmul.f32 %v1107_v3, %v908_v61 }
 0x801   : > { %v924_v7 = vmul.f32 %v1015_v4, %v916_v5 }
 0x803   : > { %v932_v8 = vadd.f32 %v1016_v6, %v924_v7 }
 0x805   : > { %933 = vst.msk [vmem:[%s314_s26] sm:$0xff] %vm327_vm1, %v932_v8 }
 0x806 PF: > { %s18_s27 = sadd.s32 1, %s1114_s27  }
 0x807   : > { %p15_p4 = scmp.ge.s32.totalorder %s18_s27, 4  }
 0x809   :  { %17 = sbr.rel (!%p15_p4) target bundleno = 1 (0x1), region = 85 }

</bundles_post_ra>
